<compile_context>
chip_gen: v7x
topology: tpu7x:2x2x1
jax: 0.10.0
libtpu: 0.0.40
codegen_flags: <defaults>
</compile_context>

<pallas_src>
import functools
import math

import jax
import jax.numpy as jnp
from jax import lax
from jax.experimental import pallas as pl
from jax.experimental.pallas import tpu as pltpu

BETA = 1e-7


# ---------------------------------------------------------------------------
# Chip-aware defaults
# ---------------------------------------------------------------------------
def _chip_defaults():
    kind = ""
    try:
        kind = jax.devices()[0].device_kind.lower()
    except Exception:
        pass
    # 128-MiB-VMEM, single-TensorCore generations.
    big_vmem = any(t in kind for t in ("v4", "v5", "v6"))
    # TODO(synk): on v7x verify the "parallel" leading grid axis really shards
    # across the two TensorCores; if not, switch to pltpu.CORE_PARALLEL.
    two_core = "v7" in kind
    num_parallel = 2 if two_core else 1
    block_bytes = (4 if big_vmem else 3) * 1024 * 1024
    vmem_limit = (64 if big_vmem else 48) * 1024 * 1024
    return num_parallel, block_bytes, vmem_limit


# ---------------------------------------------------------------------------
# Kernels
# ---------------------------------------------------------------------------
def _pearson_grouped_kernel(x_ref, y_ref, o_ref, *, n, nblocks, steps):
    """n < 128, 128 % n == 0: each 128-lane row holds 128/n whole logical rows."""
    p = pl.program_id(0)          # parallel (per-core) axis
    i = pl.program_id(1)          # arbitrary (reduction over row blocks) axis

    @pl.when(i == 0)
    def _():
        o_ref[...] = jnp.zeros_like(o_ref)

    @pl.when(p * steps + i < nblocks)   # skip duplicate (clamped) blocks
    def _():
        x = x_ref[...].astype(jnp.float32)          # (tile, 128)
        y = y_ref[...].astype(jnp.float32)

        # Block-diagonal 0/1 matrix: one n x n block of ones per lane group.
        # v @ seg = per-group sum broadcast back to the group (segment
        # all-reduce) on the otherwise-idle MXU.  n divides 128 => power of 2.
        shift = int(n).bit_length() - 1
        gi = lax.broadcasted_iota(jnp.int32, (128, 128), 0) >> shift
        gj = lax.broadcasted_iota(jnp.int32, (128, 128), 1) >> shift
        seg = (gi == gj).astype(jnp.float32)

        def segsum(v):
            return jnp.dot(v, seg, preferred_element_type=jnp.float32)

        inv_n = 1.0 / float(n)
        inv_nm1 = 1.0 / float(n - 1)

        cx = x - segsum(x) * inv_n
        cy = y - segsum(y) * inv_n
        cov = segsum(cx * cy)
        sxx = segsum(cx * cx)
        syy = segsum(cy * cy)

        denom = jnp.sqrt(sxx * syy) * inv_nm1 + BETA
        inv = pl.reciprocal(denom, approx=True)
        inv = inv * (2.0 - denom * inv)             # one Newton step (EUP + 2 VALU)
        corr = 1.0 - (cov * inv_nm1) * inv          # row value replicated n times

        # Lane-wise partial accumulation (sublane reduce only); final
        # cross-lane reduce + /n replication fixup happen in the wrapper.
        o_ref[...] += jnp.sum(corr, axis=0, keepdims=True).reshape(1, 1, 128)


def _pearson_rowwise_kernel(x_ref, y_ref, o_ref, *, n, nblocks, steps):
    """Natural (tile, n) blocks; reduction over the lane axis."""
    p = pl.program_id(0)
    i = pl.program_id(1)

    @pl.when(i == 0)
    def _():
        o_ref[...] = jnp.zeros_like(o_ref)

    @pl.when(p * steps + i < nblocks)
    def _():
        x = x_ref[...].astype(jnp.float32)          # (tile, n)
        y = y_ref[...].astype(jnp.float32)

        inv_n = 1.0 / float(n)
        inv_nm1 = 1.0 / float(n - 1)

        mx = jnp.sum(x, axis=1, keepdims=True) * inv_n
        my = jnp.sum(y, axis=1, keepdims=True) * inv_n
        cx = x - mx
        cy = y - my
        cov = jnp.sum(cx * cy, axis=1, keepdims=True)
        sxx = jnp.sum(cx * cx, axis=1, keepdims=True)
        syy = jnp.sum(cy * cy, axis=1, keepdims=True)

        denom = jnp.sqrt(sxx * syy) * inv_nm1 + BETA
        inv = pl.reciprocal(denom, approx=True)
        inv = inv * (2.0 - denom * inv)
        corr = 1.0 - (cov * inv_nm1) * inv          # (tile, 1)

        o_ref[...] += jnp.sum(corr)                 # tiny (per-row) reduce


# ---------------------------------------------------------------------------
# Pure-JAX helpers (tails / tiny inputs / reference)
# ---------------------------------------------------------------------------
def _pearson_sum_rows(x, y):
    """Sum over rows of (1 - corr) for a 2D (m, n) slab (pure JAX)."""
    n = x.shape[-1]
    x = x.astype(jnp.float32)
    y = y.astype(jnp.float32)
    cx = x - jnp.mean(x, axis=-1, keepdims=True)
    cy = y - jnp.mean(y, axis=-1, keepdims=True)
    cov = jnp.sum(cx * cy, axis=-1, keepdims=True) / (n - 1)
    sx = jnp.sqrt(jnp.sum(cx * cx, axis=-1, keepdims=True) / (n - 1))
    sy = jnp.sqrt(jnp.sum(cy * cy, axis=-1, keepdims=True) / (n - 1))
    corr = 1.0 - cov / (sx * sy + BETA)
    return jnp.sum(corr)


def _reference(predict, target):
    rows = math.prod(predict.shape[:-1])
    n = predict.shape[-1]
    return _pearson_sum_rows(predict.reshape(rows, n),
                             target.reshape(rows, n)) / rows


def _pick_tile(total, row_bytes, align, num_parallel, block_bytes):
    budget = max(align, (block_bytes // max(row_bytes, 1)) // align * align)
    per_core = (total // num_parallel) // align * align
    if per_core >= align:
        budget = min(budget, per_core)
    return min(budget, (total // align) * align)      # 0 if total < align


# ---------------------------------------------------------------------------
# Wrapper
# ---------------------------------------------------------------------------
def n_pearson_correlation(predict, target, *, num_parallel=None,
                          block_bytes=None, vmem_limit_bytes=None):
    assert predict.shape == target.shape
    n = predict.shape[-1]
    assert n > 1, "Pearson correlation needs >= 2 samples along the last axis"
    rows = math.prod(predict.shape[:-1])

    d_par, d_blk, d_vmem = _chip_defaults()
    num_parallel = d_par if num_parallel is None else num_parallel
    block_bytes = d_blk if block_bytes is None else block_bytes
    vmem_limit_bytes = d_vmem if vmem_limit_bytes is None else vmem_limit_bytes

    x = predict.reshape(rows, n)        # row-major reshape: free, no copy
    y = target.reshape(rows, n)
    itemsize = jnp.dtype(predict.dtype).itemsize
    align = max(8, 8 * (4 // max(itemsize, 1)))   # (8,128)/(16,128)/(32,128) tiles

    grouped = (n < 128) and (128 % n == 0) and ((rows * n) % 128 == 0)

    if grouped:
        # n-lane groups packed densely on the 128-lane axis (free reshape of a
        # contiguous buffer): no transpose, no pad, fully contiguous DMA.
        total = (rows * n) // 128
        xk = x.reshape(total, 128)
        yk = y.reshape(total, 128)
        row_bytes = 128 * itemsize
        kernel_fn = _pearson_grouped_kernel
        lanes = 128
    else:
        # Natural row-major layout; reduction over lanes.  Lane-dense for
        # n >= 128; for small awkward n this wastes lanes but avoids any
        # wrapper transpose/pad HBM passes.
        # TODO(synk): tile the reduction axis for enormous n (multi-pass moments).
        total = rows
        xk, yk = x, y
        row_bytes = (-(-n // 128) * 128) * itemsize   # VMEM lane padding
        kernel_fn = _pearson_rowwise_kernel
        lanes = n

    tile = _pick_tile(total, row_bytes, align, num_parallel, block_bytes)

    if tile == 0:
        # Tiny input: not worth a kernel launch.
        return _pearson_sum_rows(x, y) / rows

    nblocks = total // tile
    steps = pl.cdiv(nblocks, num_parallel)
    covered = nblocks * tile

    # Clamp so remainder blocks of the parallel split stay in bounds; the
    # in-kernel guard skips their contribution.
    in_map = lambda p, i: (jnp.minimum(p * steps + i, nblocks - 1), 0)

    kernel = functools.partial(kernel_fn, n=n, nblocks=nblocks, steps=steps)

    partials = pl.pallas_call(
        kernel,
        out_shape=jax.ShapeDtypeStruct((num_parallel, 1, 128), jnp.float32),
        grid_spec=pltpu.PrefetchScalarGridSpec(
            num_scalar_prefetch=0,
            grid=(num_parallel, steps),
            in_specs=[
                pl.BlockSpec((tile, lanes), in_map),
                pl.BlockSpec((tile, lanes), in_map),
            ],
            out_specs=pl.BlockSpec((1, 1, 128), lambda p, i: (p, 0, 0)),
        ),
        compiler_params=pltpu.CompilerParams(
            dimension_semantics=("parallel", "arbitrary"),
            vmem_limit_bytes=vmem_limit_bytes,
        ),
    )(xk, yk)

    if grouped:
        kernel_sum = jnp.sum(partials) / n      # each row's corr replicated n times
        if covered < total:
            tail_sum = _pearson_sum_rows(xk[covered:].reshape(-1, n),
                                         yk[covered:].reshape(-1, n))
        else:
            tail_sum = 0.0
    else:
        kernel_sum = jnp.sum(partials[:, 0, 0])  # every lane holds the per-core sum
        if covered < total:
            tail_sum = _pearson_sum_rows(xk[covered:], yk[covered:])
        else:
            tail_sum = 0.0

    return (kernel_sum + tail_sum) / rows


# ---------------------------------------------------------------------------
# Demo / self-test
# ---------------------------------------------------------------------------
if __name__ == "__main__":
    key = jax.random.PRNGKey(0)
    k1, k2, k3, k4 = jax.random.split(key, 4)

    def check(p, t, **kw):
        out = jax.block_until_ready(n_pearson_correlation(p, t, **kw))
        ref = jax.block_until_ready(_reference(p, t))
        assert jnp.allclose(out, ref, atol=1e-4, rtol=1e-4), (out, ref)

    # NCHW-like demo shape (W=16 -> grouped lane-dense path: no transpose, no pad)
    p1 = jax.random.normal(k1, (2, 4, 16, 16), dtype=jnp.float32)
    t1 = jax.random.normal(k2, (2, 4, 16, 16), dtype=jnp.float32)
    check(p1, t1)

    # Awkward row count (rowwise fallback + pure-JAX tail, no padding)
    p2 = jax.random.normal(k3, (3, 5, 7, 16), dtype=jnp.float32)
    t2 = jax.random.normal(k4, (3, 5, 7, 16), dtype=jnp.float32)
    check(p2, t2)

    # Wide reduction axis (n >= 128 -> natural lane-dense rowwise path)
    p3 = jax.random.normal(k1, (2, 4, 8, 256), dtype=jnp.float32)
    t3 = jax.random.normal(k2, (2, 4, 8, 256), dtype=jnp.float32)
    check(p3, t3)

    # bf16 inputs (dtype-aware sublane alignment), grouped path
    p4 = jax.random.normal(k3, (2, 4, 16, 16)).astype(jnp.bfloat16)
    t4 = jax.random.normal(k4, (2, 4, 16, 16)).astype(jnp.bfloat16)
    check(p4, t4)

    # Force the 2-way parallel grid + duplicate-block guard (v7x-style split)
    p5 = jax.random.normal(k1, (1, 24, 16, 16), dtype=jnp.float32)
    t5 = jax.random.normal(k2, (1, 24, 16, 16), dtype=jnp.float32)
    check(p5, t5, num_parallel=2, block_bytes=8 * 1024)

    print("KERNEL_OK")
</pallas_src>

<mosaic_0001>
module attributes {stable_mosaic.version = 11 : i64} {
  func.func @_pearson_grouped_kernel(%arg0: i32, %arg1: i32, %arg2: memref<16x128xf32, #tpu.memory_space<vmem>>, %arg3: memref<16x128xf32, #tpu.memory_space<vmem>>, %arg4: memref<1x1x128xf32, #tpu.memory_space<vmem>>) attributes {dimension_semantics = [#tpu.dimension_semantics<parallel>, #tpu.dimension_semantics<arbitrary>], iteration_bounds = array<i64: 1, 1>, scalar_prefetch = 0 : i64, scratch_operands = 0 : i64, tpu.core_type = #tpu.core_type<tc>, window_params = [{transform_indices = @transform_0, window_bounds = array<i64: 16, 128>}, {transform_indices = @transform_1, window_bounds = array<i64: 16, 128>}, {transform_indices = @transform_2, window_bounds = array<i64: 1, 1, 128>}]} {
    %c0_i32 = arith.constant 0 : i32
    %0 = arith.cmpi eq, %arg1, %c0_i32 : i32
    %1 = arith.extui %0 : i1 to i32
    %c0_i32_0 = arith.constant 0 : i32
    %2 = arith.cmpi ne, %1, %c0_i32_0 : i32
    scf.if %2 {
      %cst = arith.constant 0.000000e+00 : f32
      %8 = vector.broadcast %cst : f32 to vector<1x1x128xf32>
      %c0 = arith.constant 0 : index
      %c0_3 = arith.constant 0 : index
      %c0_4 = arith.constant 0 : index
      %9 = vector.load %arg4[%c0, %c0_3, %c0_4] : memref<1x1x128xf32, #tpu.memory_space<vmem>>, vector<1x1x128xf32>
      tpu.vector_store %arg4[%c0, %c0_3, %c0_4], %8 {strides = array<i32>} : memref<1x1x128xf32, #tpu.memory_space<vmem>>, vector<1x1x128xf32>,
    } else {
    }
    %c1_i32 = arith.constant 1 : i32
    %3 = arith.muli %arg0, %c1_i32 : i32
    %4 = arith.addi %3, %arg1 : i32
    %c1_i32_1 = arith.constant 1 : i32
    %5 = arith.cmpi slt, %4, %c1_i32_1 : i32
    %6 = arith.extui %5 : i1 to i32
    %c0_i32_2 = arith.constant 0 : i32
    %7 = arith.cmpi ne, %6, %c0_i32_2 : i32
    scf.if %7 {
      %c0 = arith.constant 0 : index
      %c0_3 = arith.constant 0 : index
      %8 = vector.load %arg2[%c0, %c0_3] : memref<16x128xf32, #tpu.memory_space<vmem>>, vector<16x128xf32>
      %c0_4 = arith.constant 0 : index
      %c0_5 = arith.constant 0 : index
      %9 = vector.load %arg3[%c0_4, %c0_5] : memref<16x128xf32, #tpu.memory_space<vmem>>, vector<16x128xf32>
      %10 = tpu.iota {dimensions = array<i32: 0>} : vector<128x128xi32>
      %c4_i32 = arith.constant 4 : i32
      %11 = vector.broadcast %c4_i32 : i32 to vector<128x128xi32>
      %12 = arith.shrsi %10, %11 : vector<128x128xi32>
      %13 = tpu.iota {dimensions = array<i32: 1>} : vector<128x128xi32>
      %c4_i32_6 = arith.constant 4 : i32
      %14 = vector.broadcast %c4_i32_6 : i32 to vector<128x128xi32>
      %15 = arith.shrsi %13, %14 : vector<128x128xi32>
      %16 = arith.cmpi eq, %12, %15 : vector<128x128xi32>
      %17 = arith.extui %16 : vector<128x128xi1> to vector<128x128xi32>
      %18 = arith.sitofp %17 : vector<128x128xi32> to vector<128x128xf32>
      %cst = arith.constant dense<0.000000e+00> : vector<16x128xf32>
      %19 = tpu.matmul %8, %18, %cst {dimension_numbers = #tpu.dot_dimension_numbers<[1], [0], [0], [1], [0, 0, 1, 1], [], []>} : vector<16x128xf32>, vector<128x128xf32>, vector<16x128xf32> -> vector<16x128xf32>
      %cst_7 = arith.constant 6.250000e-02 : f32
      %20 = vector.broadcast %cst_7 : f32 to vector<16x128xf32>
      %21 = arith.mulf %19, %20 : vector<16x128xf32>
      %22 = arith.subf %8, %21 : vector<16x128xf32>
      %cst_8 = arith.constant dense<0.000000e+00> : vector<16x128xf32>
      %23 = tpu.matmul %9, %18, %cst_8 {dimension_numbers = #tpu.dot_dimension_numbers<[1], [0], [0], [1], [0, 0, 1, 1], [], []>} : vector<16x128xf32>, vector<128x128xf32>, vector<16x128xf32> -> vector<16x128xf32>
      %cst_9 = arith.constant 6.250000e-02 : f32
      %24 = vector.broadcast %cst_9 : f32 to vector<16x128xf32>
      %25 = arith.mulf %23, %24 : vector<16x128xf32>
      %26 = arith.subf %9, %25 : vector<16x128xf32>
      %27 = arith.mulf %22, %26 : vector<16x128xf32>
      %cst_10 = arith.constant dense<0.000000e+00> : vector<16x128xf32>
      %28 = tpu.matmul %27, %18, %cst_10 {dimension_numbers = #tpu.dot_dimension_numbers<[1], [0], [0], [1], [0, 0, 1, 1], [], []>} : vector<16x128xf32>, vector<128x128xf32>, vector<16x128xf32> -> vector<16x128xf32>
      %29 = arith.mulf %22, %22 : vector<16x128xf32>
      %cst_11 = arith.constant dense<0.000000e+00> : vector<16x128xf32>
      %30 = tpu.matmul %29, %18, %cst_11 {dimension_numbers = #tpu.dot_dimension_numbers<[1], [0], [0], [1], [0, 0, 1, 1], [], []>} : vector<16x128xf32>, vector<128x128xf32>, vector<16x128xf32> -> vector<16x128xf32>
      %31 = arith.mulf %26, %26 : vector<16x128xf32>
      %cst_12 = arith.constant dense<0.000000e+00> : vector<16x128xf32>
      %32 = tpu.matmul %31, %18, %cst_12 {dimension_numbers = #tpu.dot_dimension_numbers<[1], [0], [0], [1], [0, 0, 1, 1], [], []>} : vector<16x128xf32>, vector<128x128xf32>, vector<16x128xf32> -> vector<16x128xf32>
      %33 = arith.mulf %30, %32 : vector<16x128xf32>
      %34 = math.sqrt %33 : vector<16x128xf32>
      %cst_13 = arith.constant 0.0666666701 : f32
      %35 = vector.broadcast %cst_13 : f32 to vector<16x128xf32>
      %36 = arith.mulf %34, %35 : vector<16x128xf32>
      %cst_14 = arith.constant 1.000000e-07 : f32
      %37 = vector.broadcast %cst_14 : f32 to vector<16x128xf32>
      %38 = arith.addf %36, %37 : vector<16x128xf32>
      %39 = tpu.reciprocal %38 {approx = true} : vector<16x128xf32> -> vector<16x128xf32>
      %40 = arith.mulf %38, %39 : vector<16x128xf32>
      %cst_15 = arith.constant 2.000000e+00 : f32
      %41 = vector.broadcast %cst_15 : f32 to vector<16x128xf32>
      %42 = arith.subf %41, %40 : vector<16x128xf32>
      %43 = arith.mulf %39, %42 : vector<16x128xf32>
      %cst_16 = arith.constant 0.0666666701 : f32
      %44 = vector.broadcast %cst_16 : f32 to vector<16x128xf32>
      %45 = arith.mulf %28, %44 : vector<16x128xf32>
      %46 = arith.mulf %45, %43 : vector<16x128xf32>
      %cst_17 = arith.constant 1.000000e+00 : f32
      %47 = vector.broadcast %cst_17 : f32 to vector<16x128xf32>
      %48 = arith.subf %47, %46 : vector<16x128xf32>
      %c0_18 = arith.constant 0 : index
      %c0_19 = arith.constant 0 : index
      %c0_20 = arith.constant 0 : index
      %49 = vector.load %arg4[%c0_18, %c0_19, %c0_20] : memref<1x1x128xf32, #tpu.memory_space<vmem>>, vector<1x1x128xf32>
      %cst_21 = arith.constant dense<0.000000e+00> : vector<128xf32>
      %50 = vector.multi_reduction <add>, %48, %cst_21 [0] : vector<16x128xf32> to vector<128xf32>
      %51 = vector.shape_cast %50 : vector<128xf32> to vector<1x128xf32>
      %52 = vector.shape_cast %51 : vector<1x128xf32> to vector<1x1x128xf32>
      %53 = arith.addf %49, %52 : vector<1x1x128xf32>
      %c0_22 = arith.constant 0 : index
      %c0_23 = arith.constant 0 : index
      %c0_24 = arith.constant 0 : index
      %54 = vector.load %arg4[%c0_22, %c0_23, %c0_24] : memref<1x1x128xf32, #tpu.memory_space<vmem>>, vector<1x1x128xf32>
      tpu.vector_store %arg4[%c0_22, %c0_23, %c0_24], %53 {strides = array<i32>} : memref<1x1x128xf32, #tpu.memory_space<vmem>>, vector<1x1x128xf32>,
    } else {
    }
    return
  }
  func.func @transform_0(%arg0: i32, %arg1: i32) -> (i32, i32) {
    %c1_i32 = arith.constant 1 : i32
    %0 = arith.muli %arg0, %c1_i32 : i32
    %1 = arith.addi %0, %arg1 : i32
    %c0_i32 = arith.constant 0 : i32
    %2 = arith.minsi %1, %c0_i32 : i32
    %c0_i32_0 = arith.constant 0 : i32
    %c0_i32_1 = arith.constant 0 : i32
    return %2, %c0_i32_0 : i32, i32
  }
  func.func @transform_1(%arg0: i32, %arg1: i32) -> (i32, i32) {
    %c1_i32 = arith.constant 1 : i32
    %0 = arith.muli %arg0, %c1_i32 : i32
    %1 = arith.addi %0, %arg1 : i32
    %c0_i32 = arith.constant 0 : i32
    %2 = arith.minsi %1, %c0_i32 : i32
    %c0_i32_0 = arith.constant 0 : i32
    %c0_i32_1 = arith.constant 0 : i32
    return %2, %c0_i32_0 : i32, i32
  }
  func.func @transform_2(%arg0: i32, %arg1: i32) -> (i32, i32, i32) {
    %c0_i32 = arith.constant 0 : i32
    %c0_i32_0 = arith.constant 0 : i32
    %c0_i32_1 = arith.constant 0 : i32
    return %arg0, %c0_i32, %c0_i32_0 : i32, i32, i32
  }
}

</mosaic_0001>

<bundles_post_ra>
// kernel: tpu_custom_call.1
= control target key start
LH: loop header
LB: loop body
LE: loop exit
PB: predicated region body
PF: predicated region fallthrough
CT: control target
= control target key end

     0   :  { %7 = vsyncpa [#allocation3], 0  ;;  %s1575_s0 = inlined_call_operand.hbm [shape: f32[16,128], index: 0, kind: input, shape index: {}]   ;;  %s1576_s1 = inlined_call_operand.hbm [shape: f32[16,128], index: 1, kind: input, shape index: {}]   ;;  %s1577_s2 = inlined_call_operand.hbm [shape: f32[1,1,128], index: 2, kind: output, shape index: {}]  }
   0x1   :  { %8 = vsyncpa [#allocation6], 0 }
   0x2   :  { %9 = vsyncpa [#allocation4], 0  ;;  %s1219_s9 = smov [#allocation2]   ;;  %s1147_s13 = scalar_lea.hbm %s1575_s0, 256 }
   0x3   :  { %s21_s10 = sshll.u32 %s1219_s9, 4  ;;  %p1148_p0 = scmp.ne.s32.totalorder %s1575_s0, %s1147_s13  ;;  %s22_s10 = int_to_ptr.vmem [resolvable:$true] %s21_s10 }
   0x4   :  { %p1151_p1 = scmp.lt.u32.totalorder %s1147_s13, %s1575_s0 }
   0x6   :  { %p1153_p2 = pnand %p1151_p1, %p1148_p0 }
   0x8   :  { %1156 = shalt.err (!%p1153_p2)
}
   0x9   :  { %s1157_s18 = scalar_lea.vmem %s22_s10, 256  ;;  %p1162_p4 = scmp.lt.s32.totalorder %s22_s10, %s22_s10 }
   0xa   :  { %p1158_p3 = scmp.ne.s32.totalorder %s22_s10, %s1157_s18  ;;  %p1163_p5 = scmp.lt.s32.totalorder %s1157_s18, %s1157_s18 }
   0xc   :  { %p1164_p6 = por %p1163_p5, %p1162_p4 }
   0xe   :  { %p1165_p7 = pnand %p1164_p6, %p1158_p3 }
  0x10   :  { %1168 = shalt.err (!%p1165_p7)
}
  0x11   :  { %s1220_s19 = smov 128   ;;  %s1221_s20 = smov 8  }
  0x12   :  { %27 = dma.hbm_to_vmem [thread:$0]  %s1575_s0, 256, %s22_s10, [#allocation3], %s1220_s19, %s1220_s19, %s1221_s20  }
  0x13   :  { %s1222_s23 = smov [#allocation5]   ;;  %s1169_s27 = scalar_lea.hbm %s1576_s1, 256 }
  0x14   :  { %s39_s24 = sshll.u32 %s1222_s23, 4  ;;  %p1170_p8 = scmp.ne.s32.totalorder %s1576_s1, %s1169_s27  ;;  %s40_s24 = int_to_ptr.vmem [resolvable:$true] %s39_s24 }
  0x15   :  { %p1173_p9 = scmp.lt.u32.totalorder %s1169_s27, %s1576_s1 }
  0x17   :  { %p1175_p10 = pnand %p1173_p9, %p1170_p8 }
  0x19   :  { %1178 = shalt.err (!%p1175_p10)
}
  0x1a   :  { %s1179_s4 = scalar_lea.vmem %s40_s24, 256  ;;  %p1184_p12 = scmp.lt.s32.totalorder %s40_s24, %s40_s24 }
  0x1b   :  { %p1180_p11 = scmp.ne.s32.totalorder %s40_s24, %s1179_s4  ;;  %p1185_p13 = scmp.lt.s32.totalorder %s1179_s4, %s1179_s4 }
  0x1d   :  { %p1186_p0 = por %p1185_p13, %p1184_p12 }
  0x1f   :  { %p1187_p1 = pnand %p1186_p0, %p1180_p11 }
  0x21   :  { %1190 = shalt.err (!%p1187_p1)
}
  0x22   :  { %45 = dma.hbm_to_vmem [thread:$0]  %s1576_s1, 256, %s40_s24, [#allocation6], %s1220_s19, %s1220_s19, %s1221_s20  }
  0x23   :  { %1213 = dma.done.wait [#allocation3], 256  }
  0x24   :  { %1214 = vsyncadd [#allocation3], 4294967040  ;;  %v74_v0 = vlaneseq }
  0x25   :  { %1215 = dma.done.wait [#allocation6], 256  }
  0x26   :  { %1216 = vsyncadd [#allocation6], 4294967040  ;;  %v75_v1 = vshrl.u32 %v74_v0, 7  ;;  %v108_v2 = vand.u32 127, %v74_v0  ;;  %v1268_v17 = vld [vmem:[#allocation2] sm:$0xff]  ;;  %v1270_v18 = vld [vmem:[#allocation5] sm:$0xff] }
  0x27   :  { %829 = vmatprep.mubr.f32.mxu0 %v1268_v17  ;;  %864 = vmatprep.mubr.f32.mxu1 %v1270_v18  ;;  %v1223_v22 = vmov 1.0|1.0   ;;  %v71_v46 = vld [vmem:[#allocation2 + $0x8] sm:$0xff]  ;;  %v73_v47 = vld [vmem:[#allocation5 + $0x8] sm:$0xff]  ;;  %s1225_s1 = smov [#allocation7]  }
  0x28   :  { %v76_v3 = vadd.s32 8, %v75_v1  ;;  %v91_v4 = vshra.s32 %v75_v1, 4  ;;  %v1265_v5 = vshra.s32 %v108_v2, 4  ;;  %v77_v6 = vadd.s32 16, %v75_v1  ;;  %s597_s6 = sshll.u32 %s1225_s1, 4  ;;  %s598_s6 = int_to_ptr.vmem [resolvable:$true] %s597_s6 }
  0x29   :  { %v78_v7 = vadd.s32 24, %v75_v1  ;;  %v79_v8 = vadd.s32 32, %v75_v1  ;;  %v80_v9 = vadd.s32 40, %v75_v1  ;;  %v81_v10 = vadd.s32 48, %v75_v1  ;;  %s1191_s7 = scalar_lea.vmem %s598_s6, 16  ;;  %s1195_s8 = scalar_lea.vmem %s598_s6, 32 }
  0x2a   :  { %v92_v11 = vshra.s32 %v76_v3, 4  ;;  %vm110_vm0 = vcmp.eq.s32.totalorder %v91_v4, %v1265_v5  ;;  %v93_v12 = vshra.s32 %v77_v6, 4  ;;  %v82_v13 = vadd.s32 56, %v75_v1  ;;  %p1192_p2 = scmp.ne.s32.totalorder %s598_s6, %s1191_s7  ;;  %p1196_p3 = scmp.lt.s32.totalorder %s598_s6, %s598_s6 }
  0x2b   :  { %v94_v14 = vshra.s32 %v78_v7, 4  ;;  %v95_v15 = vshra.s32 %v79_v8, 4  ;;  %v96_v16 = vshra.s32 %v80_v9, 4  ;;  %v97_v20 = vshra.s32 %v81_v10, 4  ;;  %p1197_p4 = scmp.lt.s32.totalorder %s1195_s8, %s1191_s7 }
  0x2c   :  { %vm111_vm1 = vcmp.eq.s32.totalorder %v92_v11, %v1265_v5  ;;  %vm112_vm2 = vcmp.eq.s32.totalorder %v93_v12, %v1265_v5  ;;  %v98_v21 = vshra.s32 %v82_v13, 4  ;;  %v83_v24 = vadd.s32 64, %v75_v1 }
  0x2d   :  { %vm1276_vm3 = vmpackc.low %vm111_vm1, %vm110_vm0  ;;  %vm113_vm4 = vcmp.eq.s32.totalorder %v94_v14, %v1265_v5  ;;  %vm114_vm6 = vcmp.eq.s32.totalorder %v95_v15, %v1265_v5  ;;  %vm115_vm7 = vcmp.eq.s32.totalorder %v96_v16, %v1265_v5  ;;  %v84_v25 = vadd.s32 72, %v75_v1  ;;  %p1198_p5 = por %p1197_p4, %p1196_p3 }
  0x2e   :  { %973 = vmatprep.subr.msk.bf16.mxu0 %vm1276_vm3, %v1223_v22  ;;  %1005 = vmatprep.subr.msk.bf16.mxu1 %vm1276_vm3, %v1223_v22  ;;  %vm1287_vm5 = vmpackc.low %vm113_vm4, %vm112_vm2  ;;  %vm116_vm9 = vcmp.eq.s32.totalorder %v97_v20, %v1265_v5  ;;  %vm117_vm10 = vcmp.eq.s32.totalorder %v98_v21, %v1265_v5  ;;  %v99_v27 = vshra.s32 %v83_v24, 4  ;;  %v85_v29 = vadd.s32 80, %v75_v1 }
  0x2f   :  { %975 = vmatpush3.bf16.msk.msra.mxu0 %vm1276_vm3, %v1223_v22  ;;  %1007 = vmatpush3.bf16.msk.msra.mxu1 %vm1276_vm3, %v1223_v22  ;;  %vm1305_vm8 = vmpackc.low %vm115_vm7, %vm114_vm6  ;;  %v100_v28 = vshra.s32 %v84_v25, 4  ;;  %v86_v30 = vadd.s32 88, %v75_v1  ;;  %v87_v32 = vadd.s32 96, %v75_v1  ;;  %v88_v33 = vadd.s32 104, %v75_v1  ;;  %p1199_p6 = pnand %p1198_p5, %p1192_p2 }
  0x30   :  { %977 = vmatprep.subr.msk.bf16.mxu0 %vm1287_vm5, %v1223_v22  ;;  %1009 = vmatprep.subr.msk.bf16.mxu1 %vm1287_vm5, %v1223_v22  ;;  %vm1323_vm11 = vmpackc.low %vm117_vm10, %vm116_vm9  ;;  %vm118_vm12 = vcmp.eq.s32.totalorder %v99_v27, %v1265_v5  ;;  %v101_v34 = vshra.s32 %v85_v29, 4  ;;  %v89_v37 = vadd.s32 112, %v75_v1  ;;  %v90_v38 = vadd.s32 120, %v75_v1 }
  0x31   :  { %vm119_vm13 = vcmp.eq.s32.totalorder %v100_v28, %v1265_v5  ;;  %v102_v35 = vshra.s32 %v86_v30, 4  ;;  %v103_v39 = vshra.s32 %v87_v32, 4  ;;  %v104_v40 = vshra.s32 %v88_v33, 4 }
  0x32   :  { %vm1341_vm14 = vmpackc.low %vm119_vm13, %vm118_vm12  ;;  %vm120_vm15 = vcmp.eq.s32.totalorder %v101_v34, %v1265_v5  ;;  %v105_v42 = vshra.s32 %v89_v37, 4  ;;  %v106_v43 = vshra.s32 %v90_v38, 4  ;;  %v1224_v2 = vmov 0.0  }
  0x33   :  { %979 = vmatpush3.bf16.msk.msra.mxu0 %vm1287_vm5, %v1223_v22  ;;  %1011 = vmatpush3.bf16.msk.msra.mxu1 %vm1287_vm5, %v1223_v22  ;;  %vm121_vm0 = vcmp.eq.s32.totalorder %v102_v35, %v1265_v5  ;;  %vm122_vm2 = vcmp.eq.s32.totalorder %v103_v39, %v1265_v5  ;;  %vm123_vm4 = vcmp.eq.s32.totalorder %v104_v40, %v1265_v5 }
  0x34   :  { %981 = vmatprep.subr.msk.bf16.mxu0 %vm1305_vm8, %v1223_v22  ;;  %1013 = vmatprep.subr.msk.bf16.mxu1 %vm1305_vm8, %v1223_v22  ;;  %vm1359_vm1 = vmpackc.low %vm121_vm0, %vm120_vm15  ;;  %vm124_vm7 = vcmp.eq.s32.totalorder %v105_v42, %v1265_v5  ;;  %vm125_vm9 = vcmp.eq.s32.totalorder %v106_v43, %v1265_v5  ;;  %64 = vst [vmem:[#allocation7] sm:$0x1] %v1224_v2 }
  0x35   :  { %vm1377_vm6 = vmpackc.low %vm123_vm4, %vm122_vm2 }
  0x36   :  { %vm1395_vm10 = vmpackc.low %vm125_vm9, %vm124_vm7 }
  0x37   :  { %983 = vmatpush3.bf16.msk.msra.mxu0 %vm1305_vm8, %v1223_v22  ;;  %1015 = vmatpush3.bf16.msk.msra.mxu1 %vm1305_vm8, %v1223_v22 }
  0x38   :  { %985 = vmatprep.subr.msk.bf16.mxu0 %vm1323_vm11, %v1223_v22  ;;  %1017 = vmatprep.subr.msk.bf16.mxu1 %vm1323_vm11, %v1223_v22 }
  0x3b   :  { %987 = vmatpush3.bf16.msk.msra.mxu0 %vm1323_vm11, %v1223_v22  ;;  %1019 = vmatpush3.bf16.msk.msra.mxu1 %vm1323_vm11, %v1223_v22  ;;  %v581_v45 = vld [vmem:[#allocation7] sm:$0x1] }
  0x3c   :  { %989 = vmatprep.subr.msk.bf16.mxu0 %vm1341_vm14, %v1223_v22  ;;  %1021 = vmatprep.subr.msk.bf16.mxu1 %vm1341_vm14, %v1223_v22 }
  0x3f   :  { %991 = vmatpush3.bf16.msk.msra.mxu0 %vm1341_vm14, %v1223_v22  ;;  %1023 = vmatpush3.bf16.msk.msra.mxu1 %vm1341_vm14, %v1223_v22 }
  0x40   :  { %993 = vmatprep.subr.msk.bf16.mxu0 %vm1359_vm1, %v1223_v22  ;;  %1025 = vmatprep.subr.msk.bf16.mxu1 %vm1359_vm1, %v1223_v22 }
  0x43   :  { %995 = vmatpush3.bf16.msk.msra.mxu0 %vm1359_vm1, %v1223_v22  ;;  %1027 = vmatpush3.bf16.msk.msra.mxu1 %vm1359_vm1, %v1223_v22 }
  0x44   :  { %997 = vmatprep.subr.msk.bf16.mxu0 %vm1377_vm6, %v1223_v22  ;;  %1029 = vmatprep.subr.msk.bf16.mxu1 %vm1377_vm6, %v1223_v22 }
  0x47   :  { %999 = vmatpush3.bf16.msk.msra.mxu0 %vm1377_vm6, %v1223_v22  ;;  %1031 = vmatpush3.bf16.msk.msra.mxu1 %vm1377_vm6, %v1223_v22 }
  0x48   :  { %1001 = vmatprep.subr.msk.bf16.mxu0 %vm1395_vm10, %v1223_v22  ;;  %1033 = vmatprep.subr.msk.bf16.mxu1 %vm1395_vm10, %v1223_v22 }
  0x4b   :  { %1003 = vmatpush3.bf16.msk.msra.mxu0 %vm1395_vm10, %v1223_v22  ;;  %1035 = vmatpush3.bf16.msk.msra.mxu1 %vm1395_vm10, %v1223_v22 }
  0x4c   :  { %1037 = vmatprep.subr.msk.bf16.mxu0 %vm1276_vm3, %v1223_v22  ;;  %1069 = vmatprep.subr.msk.bf16.mxu1 %vm1276_vm3, %v1223_v22 }
  0x4e   :  { %830 = vmatmul.mubr.f32.vlgmr.msra.gmra.mrb[0].mxu0 %v71_v46  ;;  %865 = vmatmul.mubr.f32.vlgmr.msra.gmra.mrb[0].mxu1 %v73_v47 }
  0x4f   :  { %1039 = vmatpush3.bf16.msk.msra.mxu0 %vm1276_vm3, %v1223_v22  ;;  %1071 = vmatpush3.bf16.msk.msra.mxu1 %vm1276_vm3, %v1223_v22 }
  0x50   :  { %1041 = vmatprep.subr.msk.bf16.mxu0 %vm1287_vm5, %v1223_v22  ;;  %1073 = vmatprep.subr.msk.bf16.mxu1 %vm1287_vm5, %v1223_v22 }
  0x53   :  { %1043 = vmatpush3.bf16.msk.msra.mxu0 %vm1287_vm5, %v1223_v22  ;;  %1075 = vmatpush3.bf16.msk.msra.mxu1 %vm1287_vm5, %v1223_v22 }
  0x54   :  { %1045 = vmatprep.subr.msk.bf16.mxu0 %vm1305_vm8, %v1223_v22  ;;  %1077 = vmatprep.subr.msk.bf16.mxu1 %vm1305_vm8, %v1223_v22 }
  0x57   :  { %1047 = vmatpush3.bf16.msk.msra.mxu0 %vm1305_vm8, %v1223_v22  ;;  %1079 = vmatpush3.bf16.msk.msra.mxu1 %vm1305_vm8, %v1223_v22 }
  0x58   :  { %1049 = vmatprep.subr.msk.bf16.mxu0 %vm1323_vm11, %v1223_v22  ;;  %1081 = vmatprep.subr.msk.bf16.mxu1 %vm1323_vm11, %v1223_v22 }
  0x5b   :  { %1051 = vmatpush3.bf16.msk.msra.mxu0 %vm1323_vm11, %v1223_v22  ;;  %1083 = vmatpush3.bf16.msk.msra.mxu1 %vm1323_vm11, %v1223_v22 }
  0x5c   :  { %1053 = vmatprep.subr.msk.bf16.mxu0 %vm1341_vm14, %v1223_v22  ;;  %1085 = vmatprep.subr.msk.bf16.mxu1 %vm1341_vm14, %v1223_v22 }
  0x5f   :  { %1055 = vmatpush3.bf16.msk.msra.mxu0 %vm1341_vm14, %v1223_v22  ;;  %1087 = vmatpush3.bf16.msk.msra.mxu1 %vm1341_vm14, %v1223_v22 }
  0x60   :  { %1057 = vmatprep.subr.msk.bf16.mxu0 %vm1359_vm1, %v1223_v22  ;;  %1089 = vmatprep.subr.msk.bf16.mxu1 %vm1359_vm1, %v1223_v22 }
  0x63   :  { %1059 = vmatpush3.bf16.msk.msra.mxu0 %vm1359_vm1, %v1223_v22  ;;  %1091 = vmatpush3.bf16.msk.msra.mxu1 %vm1359_vm1, %v1223_v22 }
  0x64   :  { %1061 = vmatprep.subr.msk.bf16.mxu0 %vm1377_vm6, %v1223_v22  ;;  %1093 = vmatprep.subr.msk.bf16.mxu1 %vm1377_vm6, %v1223_v22 }
  0x67   :  { %1063 = vmatpush3.bf16.msk.msra.mxu0 %vm1377_vm6, %v1223_v22  ;;  %1095 = vmatpush3.bf16.msk.msra.mxu1 %vm1377_vm6, %v1223_v22 }
  0x68   :  { %1065 = vmatprep.subr.msk.bf16.mxu0 %vm1395_vm10, %v1223_v22  ;;  %1097 = vmatprep.subr.msk.bf16.mxu1 %vm1395_vm10, %v1223_v22 }
  0x6b   :  { %1067 = vmatpush3.bf16.msk.msra.mxu0 %vm1395_vm10, %v1223_v22  ;;  %1099 = vmatpush3.bf16.msk.msra.mxu1 %vm1395_vm10, %v1223_v22 }
  0x6c   :  { %1101 = vmatprep.subr.msk.bf16.mxu0 %vm1276_vm3, %v1223_v22 }
 0x121   :  { %v831_v48 = vpop.f32.mrb[0].mxu0  ;;  %v866_v49 = vpop.f32.mrb[0].mxu1 }
 0x122   :  { %v234_v50 = vmul.f32 0.0625, %v831_v48  ;;  %v313_v51 = vmul.f32 0.0625, %v866_v49  ;;  %v224_v52 = vpop.f32.mrb[1].mxu0  ;;  %v303_v53 = vpop.f32.mrb[1].mxu1 }
 0x123   :  { %v233_v54 = vmul.f32 0.0625, %v224_v52  ;;  %v312_v55 = vmul.f32 0.0625, %v303_v53 }
 0x124   :  { %v236_v56 = vsub.f32 %v71_v46, %v234_v50  ;;  %v315_v57 = vsub.f32 %v73_v47, %v313_v51 }
 0x125   :  { %v235_v58 = vsub.f32 %v1268_v17, %v233_v54  ;;  %v314_v59 = vsub.f32 %v1270_v18, %v312_v55 }
 0x126   :  { %v317_v60 = vmul.f32 %v315_v57, %v236_v56  ;;  %v394_v63 = vmul.f32 %v236_v56, %v236_v56  ;;  %v471_v1 = vmul.f32 %v315_v57, %v315_v57 }
 0x127   :  { %v316_v61 = vmul.f32 %v314_v59, %v235_v58  ;;  %v393_v62 = vmul.f32 %v235_v58, %v235_v58  ;;  %v470_v0 = vmul.f32 %v314_v59, %v314_v59 }
 0x129   :  { %899 = vmatprep.mubr.f32.mxu0 %v316_v61  ;;  %934 = vmatprep.mubr.f32.mxu1 %v393_v62 }
 0x12a   :  { %900 = vmatmul.mubr.f32.vlgmr.msra.gmra.mrb[2].mxu0 %v317_v60  ;;  %935 = vmatmul.mubr.f32.vlgmr.msra.gmra.mrb[2].mxu1 %v394_v63 }
 0x12b   :  { %1103 = vmatpush3.bf16.msk.msra.mxu0 %vm1276_vm3, %v1223_v22  ;;  %969 = vmatprep.mubr.f32.mxu0 %v470_v0 }
 0x12c   :  { %1105 = vmatprep.subr.msk.bf16.mxu0 %vm1287_vm5, %v1223_v22 }
 0x12f   :  { %1107 = vmatpush3.bf16.msk.msra.mxu0 %vm1287_vm5, %v1223_v22 }
 0x130   :  { %1109 = vmatprep.subr.msk.bf16.mxu0 %vm1305_vm8, %v1223_v22 }
 0x133   :  { %1111 = vmatpush3.bf16.msk.msra.mxu0 %vm1305_vm8, %v1223_v22 }
 0x134   :  { %1113 = vmatprep.subr.msk.bf16.mxu0 %vm1323_vm11, %v1223_v22 }
 0x137   :  { %1115 = vmatpush3.bf16.msk.msra.mxu0 %vm1323_vm11, %v1223_v22 }
 0x138   :  { %1117 = vmatprep.subr.msk.bf16.mxu0 %vm1341_vm14, %v1223_v22 }
 0x13b   :  { %1119 = vmatpush3.bf16.msk.msra.mxu0 %vm1341_vm14, %v1223_v22 }
 0x13c   :  { %1121 = vmatprep.subr.msk.bf16.mxu0 %vm1359_vm1, %v1223_v22 }
 0x13f   :  { %1123 = vmatpush3.bf16.msk.msra.mxu0 %vm1359_vm1, %v1223_v22 }
 0x140   :  { %1125 = vmatprep.subr.msk.bf16.mxu0 %vm1377_vm6, %v1223_v22 }
 0x143   :  { %1127 = vmatpush3.bf16.msk.msra.mxu0 %vm1377_vm6, %v1223_v22 }
 0x144   :  { %1129 = vmatprep.subr.msk.bf16.mxu0 %vm1395_vm10, %v1223_v22 }
 0x147   :  { %1131 = vmatpush3.bf16.msk.msra.mxu0 %vm1395_vm10, %v1223_v22 }
 0x14a   :  { %970 = vmatmul.mubr.f32.vlgmr.msra.gmra.mrb[4].mxu0 %v471_v1 }
 0x1fd   :  { %v901_v3 = vpop.f32.mrb[2].mxu0  ;;  %v936_v4 = vpop.f32.mrb[2].mxu1 }
 0x1fe   :  { %v384_v5 = vpop.f32.mrb[3].mxu0  ;;  %v461_v6 = vpop.f32.mrb[3].mxu1  ;;  %v576_v31 = vmul.f32 0.06666667, %v901_v3 }
 0x1ff   :  { %v575_v33 = vmul.f32 0.06666667, %v384_v5 }
 0x21d   :  { %v971_v7 = vpop.f32.mrb[4].mxu0 }
 0x21e   :  { %v548_v8 = vmul.f32 %v971_v7, %v936_v4  ;;  %v538_v9 = vpop.f32.mrb[5].mxu0 }
 0x21f   :  { %v547_v10 = vmul.f32 %v538_v9, %v461_v6 }
 0x220   :  { %1139 = vrsqrt.f32 %v548_v8  ;;  %vm558_vm3 = vcmp.eq.f32.partialorder %v548_v8, inf  ;;  %v561_v14 = vand.u32 2147483648, %v548_v8  ;;  %vm560_vm5 = vcmp.eq.f32.partialorder %v548_v8, 0.0 }
 0x221   :  { %1141 = vrsqrt.f32 %v547_v10  ;;  %vm551_vm8 = vcmp.eq.f32.partialorder %v547_v10, inf  ;;  %v554_v17 = vand.u32 2147483648, %v547_v10  ;;  %vm553_vm11 = vcmp.eq.f32.partialorder %v547_v10, 0.0 }
 0x22a   :  { %v1140_v11 = vpop.eup %1139 }
 0x22b   :  { %v1142_v12 = vpop.eup %1141  ;;  %v557_v13 = vmul.f32 %v1140_v11, %v548_v8 }
 0x22c   :  { %v550_v15 = vmul.f32 %v1142_v12, %v547_v10 }
 0x22d   :  { %v559_v16 = vsel %vm558_vm3, %v548_v8, %v557_v13 }
 0x22e   :  { %v562_v18 = vsel %vm560_vm5, %v561_v14, %v559_v16  ;;  %v552_v19 = vsel %vm551_vm8, %v547_v10, %v550_v15 }
 0x22f   :  { %v564_v20 = vmul.f32 0.06666667, %v562_v18  ;;  %v555_v21 = vsel %vm553_vm11, %v554_v17, %v552_v19 }
 0x230   :  { %v563_v22 = vmul.f32 0.06666667, %v555_v21 }
 0x231   :  { %v566_v23 = vadd.f32 1e-07, %v564_v20 }
 0x232   :  { %v565_v24 = vadd.f32 1e-07, %v563_v22 }
 0x233   :  { %1143 = vrcp.f32 %v566_v23 }
 0x234   :  { %1145 = vrcp.f32 %v565_v24 }
 0x23d   :  { %v1144_v25 = vpop.eup %1143 }
 0x23e   :  { %v1146_v26 = vpop.eup %1145  ;;  %v570_v27 = vmul.f32 %v1144_v25, %v566_v23 }
 0x23f   :  { %v569_v28 = vmul.f32 %v1146_v26, %v565_v24 }
 0x240   :  { %v572_v29 = vsub.f32 2.0, %v570_v27 }
 0x241   :  { %v571_v30 = vsub.f32 2.0, %v569_v28 }
 0x242   :  { %v574_v32 = vmul.f32 %v1144_v25, %v572_v29 }
 0x243   :  { %v573_v34 = vmul.f32 %v1146_v26, %v571_v30 }
 0x244   :  { %v578_v35 = vmul.f32 %v576_v31, %v574_v32 }
 0x245   :  { %v577_v36 = vmul.f32 %v575_v33, %v573_v34 }
 0x246   :  { %v580_v37 = vsub.f32 1.0, %v578_v35 }
 0x247   :  { %v579_v38 = vsub.f32 1.0, %v577_v36 }
 0x249   :  { %v582_v39 = vadd.f32 %v580_v37, %v579_v38 }
 0x24b   :  { %v583_v40 = vrot.slane %v582_v39, 4 }
 0x24d   :  { %v584_v41 = vadd.f32 %v583_v40, %v582_v39 }
 0x24f   :  { %v585_v42 = vrot.slane %v584_v41, 2 }
 0x251   :  { %v586_v43 = vadd.f32 %v585_v42, %v584_v41 }
 0x253   :  { %v587_v44 = vrot.slane %v586_v43, 1 }
 0x255   :  { %v588_v46 = vadd.f32 %v587_v44, %v586_v43 }
 0x257   :  { %v589_v47 = vadd.f32 %v588_v46, %v581_v45 }
 0x259   :  { %590 = vst [vmem:[#allocation7] sm:$0x1] %v589_v47 }
 0x25a   :  { %1202 = shalt.err (!%p1199_p6)
}
 0x25b   :  { %s1203_s11 = scalar_lea.hbm %s1577_s2, 16 }
 0x25c   :  { %p1204_p7 = scmp.ne.s32.totalorder %s1577_s2, %s1203_s11  ;;  %p1207_p8 = scmp.lt.u32.totalorder %s1203_s11, %s1577_s2 }
 0x25e   :  { %p1209_p9 = pnand %p1207_p8, %p1204_p7 }
 0x260   :  { %1212 = shalt.err (!%p1209_p9)
}
 0x261   :  { %600 = dma.vmem_to_hbm [thread:$0]  %s598_s6, 16, %s1577_s2, [#allocation4]  }
 0x262   :  { %1217 = dma.done.wait [#allocation4], 16  }
 0x263   :  { %1218 = vsyncadd [#allocation4], 4294967280 }
 0x264   :  { %604 = vsyncpa [#allocation3], 1 }
 0x265   :  { %605 = vsyncpa [#allocation6], 1 }
 0x266   :  { %606 = vsyncpa [#allocation4], 1 }

</bundles_post_ra>
